<compile_context>
chip_gen: v5e
topology: v5e:2x2
jax: 0.10.0
libtpu: 0.0.40
codegen_flags: <defaults>
</compile_context>

<pallas_src>
import functools

import jax
import jax.numpy as jnp
from jax.experimental import pallas as pl
from jax.experimental.pallas import tpu as pltpu

# Original nn.Linear dims (out_features, in_features), forward order.
_LAYER_DIMS = ((12, 21), (6, 12), (3, 6), (6, 3), (12, 6), (21, 12))
_TANH_LAYERS = (0, 1, 3, 4)          # Tanh after these original layers

# After fusing the tanh-less pair (3,6)+(6,3) into one (6,6) layer.
_FUSED_DIMS = ((12, 21), (6, 12), (6, 6), (12, 6), (21, 12))
_FUSED_TANH = (0, 1, 2, 3)           # Tanh after all fused layers except the output one
_N_FUSED = len(_FUSED_DIMS)

_IN_F = 21
_PAD = 24                            # padded rows/cols of the packed parameter slab
_BIAS_COL = 21                       # bias lives in this column (weights use cols 0..20)
_LANE = 128
_MIN_GRID = 4                        # keep >=4 grid steps when B allows (v7x megacore)
_VMEM_LIMIT = 48 * 1024 * 1024       # < v7x's 64 MiB/core; > v5e's 16 MiB default scoped


def _round_up(n, m):
    return ((n + m - 1) // m) * m


def _autoencoder_kernel(w_ref, x_ref, out_ref):
    # x_ref: (21, TB) tile, batch on the 128-wide lane axis.
    # w_ref: packed (5, 24, 24) parameter slab, resident in VMEM (constant index_map).
    h = x_ref[...]
    if h.dtype != jnp.float32:       # cast only when I/O is not already f32 (e.g. bf16)
        h = h.astype(jnp.float32)
    for li in range(_N_FUSED):
        if li == 0:
            w = w_ref[li, :, :_IN_F]                       # (24, 21): input h has 21 rows
            b = w_ref[li, :, _BIAS_COL:_BIAS_COL + 1]      # (24, 1)
        elif li == _N_FUSED - 1:
            w = w_ref[li, :_IN_F, :]                       # (21, 24): produce exactly 21 rows
            b = w_ref[li, :_IN_F, _BIAS_COL:_BIAS_COL + 1]  # (21, 1)
        else:
            # Full padded (24,24) weight: row 21 of h is always zero, so the embedded
            # bias column contributes nothing to the dot; padded rows/cols stay zero.
            w = w_ref[li]                                  # (24, 24)
            b = w_ref[li, :, _BIAS_COL:_BIAS_COL + 1]      # (24, 1)
        h = jnp.dot(w, h, preferred_element_type=jnp.float32) + b   # MXU, f32 accumulate
        if li in _FUSED_TANH:
            h = jnp.tanh(h)                                # single EUP vtanh per element
    out_ref[...] = h.astype(out_ref.dtype)


def _fuse_params(params):
    """Fuse L2 (3,6) and L3 (6,3) -- no Tanh between them -- into one exact (6,6) layer."""
    f32 = lambda a: jnp.asarray(a, jnp.float32)
    w3, b3 = f32(params["w3"]), f32(params["b3"])
    w4, b4 = f32(params["w4"]), f32(params["b4"])
    wf = w4 @ w3                       # (6, 6)
    bf = w4 @ b3 + b4                  # (6,)
    ws = (f32(params["w1"]), f32(params["w2"]), wf, f32(params["w5"]), f32(params["w6"]))
    bs = (f32(params["b1"]), f32(params["b2"]), bf, f32(params["b5"]), f32(params["b6"]))
    return ws, bs


def _pack_params(params):
    """Pack the 5 fused (W, b) pairs into one (5, 24, 24) f32 slab; bias in column 21."""
    ws, bs = _fuse_params(params)
    wpack = jnp.zeros((_N_FUSED, _PAD, _PAD), jnp.float32)
    for li, (w, b) in enumerate(zip(ws, bs)):
        out_f, in_f = w.shape
        wpack = wpack.at[li, :out_f, :in_f].set(w)
        wpack = wpack.at[li, :out_f, _BIAS_COL].set(b)
    return wpack


def _forward_fb_impl(xt, params, tile_b):
    """xt: (21, B) lane-dense layout (batch on lanes). Returns (21, B)."""
    F, B = xt.shape
    assert F == _IN_F, F
    assert tile_b % _LANE == 0 and tile_b >= _LANE

    wpack = _pack_params(params)

    # Lane tile: multiple of 128, capped at tile_b, clamped so the grid has >=_MIN_GRID
    # steps when B is large enough (keeps both v7x TensorCores busy).
    target = _round_up(max(-(-B // _MIN_GRID), _LANE), _LANE)
    TB = min(tile_b, target)
    grid = (pl.cdiv(B, TB),)           # partial last block handled by Pallas (no jnp.pad)

    itemsize = jnp.dtype(xt.dtype).itemsize
    out_t = pl.pallas_call(
        _autoencoder_kernel,
        out_shape=jax.ShapeDtypeStruct((F, B), xt.dtype),
        grid=grid,
        in_specs=[
            # Packed params: full-array block, constant index -> fetched once, resident.
            pl.BlockSpec((_N_FUSED, _PAD, _PAD), lambda i: (0, 0, 0)),
            # Input tile: (21, TB) marching along the lane (batch) axis.
            pl.BlockSpec((F, TB), lambda i: (0, i)),
        ],
        out_specs=pl.BlockSpec((F, TB), lambda i: (0, i)),
        input_output_aliases={1: 0},   # reuse the transposed-input HBM buffer for the output
        compiler_params=pltpu.CompilerParams(
            dimension_semantics=("parallel",),
            vmem_limit_bytes=_VMEM_LIMIT),
        cost_estimate=pl.CostEstimate(
            flops=2 * 684 * B,                 # sum of out*in over the fused layers
            transcendentals=36 * B,            # tanh on 12+6+6+12 features per sample
            bytes_accessed=2 * F * B * itemsize + _N_FUSED * _PAD * _PAD * 4),
    )(wpack, xt)
    return out_t


@functools.partial(jax.jit, static_argnames=("tile_b",))
def autoencoder_forward_fb(xt, params, *, tile_b=32768):
    """Lane-dense entry point: xt is (21, B); no transposes are performed."""
    return _forward_fb_impl(xt, params, tile_b)


@functools.partial(jax.jit, static_argnames=("tile_b",))
def autoencoder_forward(x, params, *, tile_b=32768):
    """PyTorch-style API: x is (B, 21). The only layout plumbing is one transpose each way;
    callers that already hold (21, B) data should use autoencoder_forward_fb instead."""
    return _forward_fb_impl(x.T, params, tile_b).T


def init_params(key):
    """nn.Linear-style U(-1/sqrt(fan_in), 1/sqrt(fan_in)) init, PyTorch (out, in) layout."""
    params = {}
    for li, (out_f, in_f) in enumerate(_LAYER_DIMS, start=1):
        key, kw, kb = jax.random.split(key, 3)
        bound = 1.0 / (in_f ** 0.5)
        params[f"w{li}"] = jax.random.uniform(
            kw, (out_f, in_f), dtype=jnp.float32, minval=-bound, maxval=bound)
        params[f"b{li}"] = jax.random.uniform(
            kb, (out_f,), dtype=jnp.float32, minval=-bound, maxval=bound)
    return params


def reference_forward(x, params):
    """Pure-JAX reference of the ORIGINAL (unfused) 6-layer module."""
    h = x
    for li in range(len(_LAYER_DIMS)):
        h = h @ params[f"w{li + 1}"].T + params[f"b{li + 1}"]
        if li in _TANH_LAYERS:
            h = jnp.tanh(h)
    return h


if __name__ == "__main__":
    key = jax.random.PRNGKey(0)
    key, kx = jax.random.split(key)

    batch = 16
    x = jax.random.normal(kx, (batch, _IN_F), dtype=jnp.float32)
    params = init_params(key)

    out = autoencoder_forward(x, params)
    out = jax.block_until_ready(out)

    ref = reference_forward(x, params)
    assert out.shape == (batch, _IN_F), out.shape
    assert jnp.allclose(out, ref, atol=1e-4, rtol=1e-4), "mismatch vs JAX reference"

    # Lane-dense path (no transposes) must agree as well.
    out_fb = jax.block_until_ready(autoencoder_forward_fb(x.T, params))
    assert jnp.allclose(out_fb.T, ref, atol=1e-4, rtol=1e-4), "mismatch (fb path)"

    print("KERNEL_OK")
</pallas_src>

<mosaic_0001>
module attributes {stable_mosaic.version = 11 : i64} {
  func.func @_autoencoder_kernel(%arg0: i32, %arg1: memref<5x24x24xf32, #tpu.memory_space<vmem>>, %arg2: memref<21x128xf32, #tpu.memory_space<vmem>>, %arg3: memref<21x128xf32, #tpu.memory_space<vmem>>) attributes {dimension_semantics = [#tpu.dimension_semantics<parallel>], iteration_bounds = array<i64: 1>, scalar_prefetch = 0 : i64, scratch_operands = 0 : i64, tpu.core_type = #tpu.core_type<tc>, window_params = [{pipeline_mode = #tpu.pipeline_mode<synchronous>, transform_indices = @transform_0, window_bounds = array<i64: 5, 24, 24>}, {transform_indices = @transform_1, window_bounds = array<i64: 21, 128>}, {transform_indices = @transform_2, window_bounds = array<i64: 21, 128>}]} {
    %c0 = arith.constant 0 : index
    %c0_0 = arith.constant 0 : index
    %0 = vector.load %arg2[%c0, %c0_0] : memref<21x128xf32, #tpu.memory_space<vmem>>, vector<21x128xf32>
    %c0_1 = arith.constant 0 : index
    %c0_2 = arith.constant 0 : index
    %c0_3 = arith.constant 0 : index
    %1 = vector.load %arg1[%c0_1, %c0_2, %c0_3] : memref<5x24x24xf32, #tpu.memory_space<vmem>>, vector<1x24x21xf32>
    %2 = vector.shape_cast %1 : vector<1x24x21xf32> to vector<24x21xf32>
    %c0_4 = arith.constant 0 : index
    %c0_5 = arith.constant 0 : index
    %c21 = arith.constant 21 : index
    %3 = vector.load %arg1[%c0_4, %c0_5, %c21] : memref<5x24x24xf32, #tpu.memory_space<vmem>>, vector<1x24x1xf32>
    %4 = vector.shape_cast %3 : vector<1x24x1xf32> to vector<24x1xf32>
    %cst = arith.constant dense<0.000000e+00> : vector<24x128xf32>
    %5 = tpu.matmul %2, %0, %cst {dimension_numbers = #tpu.dot_dimension_numbers<[1], [0], [0], [1], [0, 0, 1, 1], [], []>} : vector<24x21xf32>, vector<21x128xf32>, vector<24x128xf32> -> vector<24x128xf32>
    %6 = vector.broadcast %4 : vector<24x1xf32> to vector<24x128xf32>
    %7 = arith.addf %5, %6 : vector<24x128xf32>
    %8 = math.tanh %7 : vector<24x128xf32>
    %c1 = arith.constant 1 : index
    %c0_6 = arith.constant 0 : index
    %c0_7 = arith.constant 0 : index
    %9 = vector.load %arg1[%c1, %c0_6, %c0_7] : memref<5x24x24xf32, #tpu.memory_space<vmem>>, vector<1x24x24xf32>
    %10 = vector.shape_cast %9 : vector<1x24x24xf32> to vector<24x24xf32>
    %c1_8 = arith.constant 1 : index
    %c0_9 = arith.constant 0 : index
    %c21_10 = arith.constant 21 : index
    %11 = vector.load %arg1[%c1_8, %c0_9, %c21_10] : memref<5x24x24xf32, #tpu.memory_space<vmem>>, vector<1x24x1xf32>
    %12 = vector.shape_cast %11 : vector<1x24x1xf32> to vector<24x1xf32>
    %cst_11 = arith.constant dense<0.000000e+00> : vector<24x128xf32>
    %13 = tpu.matmul %10, %8, %cst_11 {dimension_numbers = #tpu.dot_dimension_numbers<[1], [0], [0], [1], [0, 0, 1, 1], [], []>} : vector<24x24xf32>, vector<24x128xf32>, vector<24x128xf32> -> vector<24x128xf32>
    %14 = vector.broadcast %12 : vector<24x1xf32> to vector<24x128xf32>
    %15 = arith.addf %13, %14 : vector<24x128xf32>
    %16 = math.tanh %15 : vector<24x128xf32>
    %c2 = arith.constant 2 : index
    %c0_12 = arith.constant 0 : index
    %c0_13 = arith.constant 0 : index
    %17 = vector.load %arg1[%c2, %c0_12, %c0_13] : memref<5x24x24xf32, #tpu.memory_space<vmem>>, vector<1x24x24xf32>
    %18 = vector.shape_cast %17 : vector<1x24x24xf32> to vector<24x24xf32>
    %c2_14 = arith.constant 2 : index
    %c0_15 = arith.constant 0 : index
    %c21_16 = arith.constant 21 : index
    %19 = vector.load %arg1[%c2_14, %c0_15, %c21_16] : memref<5x24x24xf32, #tpu.memory_space<vmem>>, vector<1x24x1xf32>
    %20 = vector.shape_cast %19 : vector<1x24x1xf32> to vector<24x1xf32>
    %cst_17 = arith.constant dense<0.000000e+00> : vector<24x128xf32>
    %21 = tpu.matmul %18, %16, %cst_17 {dimension_numbers = #tpu.dot_dimension_numbers<[1], [0], [0], [1], [0, 0, 1, 1], [], []>} : vector<24x24xf32>, vector<24x128xf32>, vector<24x128xf32> -> vector<24x128xf32>
    %22 = vector.broadcast %20 : vector<24x1xf32> to vector<24x128xf32>
    %23 = arith.addf %21, %22 : vector<24x128xf32>
    %24 = math.tanh %23 : vector<24x128xf32>
    %c3 = arith.constant 3 : index
    %c0_18 = arith.constant 0 : index
    %c0_19 = arith.constant 0 : index
    %25 = vector.load %arg1[%c3, %c0_18, %c0_19] : memref<5x24x24xf32, #tpu.memory_space<vmem>>, vector<1x24x24xf32>
    %26 = vector.shape_cast %25 : vector<1x24x24xf32> to vector<24x24xf32>
    %c3_20 = arith.constant 3 : index
    %c0_21 = arith.constant 0 : index
    %c21_22 = arith.constant 21 : index
    %27 = vector.load %arg1[%c3_20, %c0_21, %c21_22] : memref<5x24x24xf32, #tpu.memory_space<vmem>>, vector<1x24x1xf32>
    %28 = vector.shape_cast %27 : vector<1x24x1xf32> to vector<24x1xf32>
    %cst_23 = arith.constant dense<0.000000e+00> : vector<24x128xf32>
    %29 = tpu.matmul %26, %24, %cst_23 {dimension_numbers = #tpu.dot_dimension_numbers<[1], [0], [0], [1], [0, 0, 1, 1], [], []>} : vector<24x24xf32>, vector<24x128xf32>, vector<24x128xf32> -> vector<24x128xf32>
    %30 = vector.broadcast %28 : vector<24x1xf32> to vector<24x128xf32>
    %31 = arith.addf %29, %30 : vector<24x128xf32>
    %32 = math.tanh %31 : vector<24x128xf32>
    %c4 = arith.constant 4 : index
    %c0_24 = arith.constant 0 : index
    %c0_25 = arith.constant 0 : index
    %33 = vector.load %arg1[%c4, %c0_24, %c0_25] : memref<5x24x24xf32, #tpu.memory_space<vmem>>, vector<1x21x24xf32>
    %34 = vector.shape_cast %33 : vector<1x21x24xf32> to vector<21x24xf32>
    %c4_26 = arith.constant 4 : index
    %c0_27 = arith.constant 0 : index
    %c21_28 = arith.constant 21 : index
    %35 = vector.load %arg1[%c4_26, %c0_27, %c21_28] : memref<5x24x24xf32, #tpu.memory_space<vmem>>, vector<1x21x1xf32>
    %36 = vector.shape_cast %35 : vector<1x21x1xf32> to vector<21x1xf32>
    %cst_29 = arith.constant dense<0.000000e+00> : vector<21x128xf32>
    %37 = tpu.matmul %34, %32, %cst_29 {dimension_numbers = #tpu.dot_dimension_numbers<[1], [0], [0], [1], [0, 0, 1, 1], [], []>} : vector<21x24xf32>, vector<24x128xf32>, vector<21x128xf32> -> vector<21x128xf32>
    %38 = vector.broadcast %36 : vector<21x1xf32> to vector<21x128xf32>
    %39 = arith.addf %37, %38 : vector<21x128xf32>
    %c0_30 = arith.constant 0 : index
    %c0_31 = arith.constant 0 : index
    %40 = vector.load %arg3[%c0_30, %c0_31] : memref<21x128xf32, #tpu.memory_space<vmem>>, vector<21x128xf32>
    tpu.vector_store %arg3[%c0_30, %c0_31], %39 {strides = array<i32>} : memref<21x128xf32, #tpu.memory_space<vmem>>, vector<21x128xf32>,
    return
  }
  func.func @transform_0(%arg0: i32) -> (i32, i32, i32) {
    %c0_i32 = arith.constant 0 : i32
    %c0_i32_0 = arith.constant 0 : i32
    %c0_i32_1 = arith.constant 0 : i32
    %c0_i32_2 = arith.constant 0 : i32
    return %c0_i32, %c0_i32_0, %c0_i32_1 : i32, i32, i32
  }
  func.func @transform_1(%arg0: i32) -> (i32, i32) {
    %c0_i32 = arith.constant 0 : i32
    %c0_i32_0 = arith.constant 0 : i32
    return %c0_i32, %arg0 : i32, i32
  }
  func.func @transform_2(%arg0: i32) -> (i32, i32) {
    %c0_i32 = arith.constant 0 : i32
    %c0_i32_0 = arith.constant 0 : i32
    return %c0_i32, %arg0 : i32, i32
  }
}

</mosaic_0001>

<bundles_post_ra>
// kernel: autoencoder_forward.1
= control target key start
LH: loop header
LB: loop body
LE: loop exit
PB: predicated region body
PF: predicated region fallthrough
CT: control target
= control target key end

     0   :  { %vm39_vm0 = vcmask 1044480   ;;  %v355_v0 = vmov 21   ;;  %vm32_vm1 = vcmask 171008   ;;  %vm91_vm2 = vcmask 195584   ;;  %s473_s1 = inlined_call_operand.vmem [shape: f32[21,16], index: 1, kind: input, shape index: {}, may-alias: {1,2}]   ;;  %s474_s0 = inlined_call_operand.vmem [shape: f32[5,24,24], index: 0, kind: input, shape index: {}]   ;;  %s475_s2 = inlined_call_operand.vmem [shape: f32[21,16], index: 2, kind: output, shape index: {}, may-alias: {1,2}]  }
   0x1   :  { %329 = vset.pattern.permute.xlu1 %v355_v0  ;;  %328 = vset.pattern.permute.xlu0 %v355_v0  ;;  %v13_v1 = vld [vmem:[%s473_s1 + $0x10] sm:$0x1f]  ;;  %v14_v3 = vld [vmem:[%s474_s0] sm:$0xff]  ;;  %v12_v4 = vld [vmem:[%s473_s1 + $0x8] sm:$0xff] }
   0x2   :  { %v16_v2 = vld [vmem:[%s474_s0 + $0x10] sm:$0xff]  ;;  %321 = vmatpush.msk.msra.mxu1 %vm39_vm0, %v13_v1  ;;  %322 = vmatpush.msk.msra.mxu2 %vm39_vm0, %v13_v1  ;;  %v11_v5 = vld [vmem:[%s473_s1] sm:$0xff]  ;;  %v15_v6 = vld [vmem:[%s474_s0 + $0x8] sm:$0xff] }
   0x3   :  { %29 = vperm.xlu0 %328, %v16_v2   ;;  %19 = vperm.xlu1 %329, %v14_v3   ;;  %v299_v7 = vld [vmem:[%s474_s0 + $0x28] sm:$0xff]  ;;  %v398_v8 = vld [vmem:[%s474_s0 + $0x40] sm:$0xff]  ;;  %v304_v9 = vld [vmem:[%s474_s0 + $0x38] sm:$0xff] }
   0x4   :  { %323 = vmatpush.msra.mxu1 %v12_v4  ;;  %324 = vmatpush.msra.mxu2 %v12_v4  ;;  %v407_v10 = vld [vmem:[%s474_s0 + $0x58] sm:$0xff]  ;;  %v412_v11 = vld [vmem:[%s474_s0 + $0x50] sm:$0xff]  ;;  %v419_v12 = vld [vmem:[%s474_s0 + $0x60] sm:$0xff] }
   0x5   :  { %293 = vmatpush.msk.msra.mxu0 %vm39_vm0, %v13_v1  ;;  %330 = vset.pattern.permute.xlu2 %v355_v0  ;;  %v424_v13 = vld [vmem:[%s474_s0 + $0x68] sm:$0xff]  ;;  %v298_v14 = vld [vmem:[%s474_s0 + $0x20] sm:$0xff]  ;;  %v297_v16 = vld [vmem:[%s474_s0 + $0x18] sm:$0xff] }
   0x6   :  { %325 = vmatpush.msra.mxu1 %v11_v5  ;;  %326 = vmatpush.msra.mxu2 %v11_v5  ;;  %v303_v20 = vld [vmem:[%s474_s0 + $0x30] sm:$0xff]  ;;  %v309_v26 = vld [vmem:[%s474_s0 + $0x48] sm:$0xff] }
   0x7   :  { %295 = vmatmul.msk.f32.vlgmr.msra.gmra.mxu1 %vm32_vm1, %v15_v6  ;;  %296 = vmatmul.msk.f32.vlgmr.msra.gmra.mxu2 %vm32_vm1, %v16_v2  ;;  %v443_v30 = vld [vmem:[%s474_s0 + $0x70] sm:$0x1f] }
   0x8   :  { %57 = vmatpush.msra.mxu0 %v12_v4  ;;  %83 = vperm.xlu2 %330, %v298_v14  }
   0xa   :  { %58 = vmatpush.msra.mxu0 %v11_v5 }
   0xb   :  { %24 = vperm.xlu0 %328, %v15_v6   ;;  %88 = vperm.xlu1 %329, %v299_v7  }
   0xc   :  { %294 = vmatmul.msk.f32.vlgmr.msra.gmra.mxu0 %vm32_vm1, %v14_v3 }
  0x10   :  { %78 = vperm.xlu2 %330, %v297_v16  }
  0x13   :  { %143 = vperm.xlu0 %328, %v398_v8   ;;  %138 = vperm.xlu1 %329, %v304_v9  }
  0x18   :  { %133 = vperm.xlu2 %330, %v303_v20  }
  0x1b   :  { %197 = vperm.xlu0 %328, %v407_v10   ;;  %192 = vperm.xlu1 %329, %v412_v11  }
  0x20   :  { %187 = vperm.xlu2 %330, %v309_v26  }
  0x23   :  { %241 = vperm.xlu0 %328, %v419_v12   ;;  %246 = vperm.xlu1 %329, %v424_v13  }
  0x28   :  { %251 = vperm.xlu2 %330, %v443_v30  }
  0x62   :  { %v84_v32 = vpop.permute.xlu2 %83 }
  0x6a   :  { %v79_v38 = vpop.permute.xlu2 %78 }
  0x72   :  { %v134_v50 = vpop.permute.xlu2 %133 }
  0x75   :  { %v30_v15 = vpop.permute.xlu0 %29  ;;  %v20_v21 = vpop.permute.xlu1 %19 }
  0x7a   :  { %v188_v62 = vpop.permute.xlu2 %187 }
  0x7d   :  { %v25_v18 = vpop.permute.xlu0 %24  ;;  %v89_v34 = vpop.permute.xlu1 %88 }
  0x84   :  { %v63_v17 = vpop.f32.mrf.mxu1 }
  0x85   :  { %v64_v22 = vadd.f32 %v63_v17, %v25_v18  ;;  %v144_v45 = vpop.permute.xlu0 %143  ;;  %v139_v46 = vpop.permute.xlu1 %138 }
  0x89   :  { %v60_v19 = vpop.f32.mrf.mxu0 }
  0x8a   :  { %v66_v23 = vpop.f32.mrf.mxu2  ;;  %v61_v25 = vadd.f32 %v60_v19, %v20_v21 }
  0x8b   :  { %v67_v24 = vadd.f32 %v66_v23, %v30_v15 }
  0x8d   :  { %331 = vtanh.f32 %v67_v24  ;;  %v198_v57 = vpop.permute.xlu0 %197  ;;  %v193_v58 = vpop.permute.xlu1 %192 }
  0x8e   :  { %333 = vtanh.f32 %v64_v22 }
  0x8f   :  { %335 = vtanh.f32 %v61_v25 }
  0x93   :  { %v332_v27 = vpop.eup %331 }
  0x94   :  { %v334_v28 = vpop.eup %333  ;;  %111 = vmatpush.msrb.mxu1 %v332_v27 }
  0x95   :  { %v336_v29 = vpop.eup %335  ;;  %v242_v3 = vpop.permute.xlu0 %241 }
  0x96   :  { %112 = vmatpush.msrb.mxu1 %v334_v28  ;;  %v247_v6 = vpop.permute.xlu1 %246 }
  0x98   :  { %113 = vmatpush.msrb.mxu1 %v336_v29 }
  0x99   :  { %300 = vmatmul.msk.f32.vlgmr.msrb.gmra.mxu1 %vm91_vm2, %v297_v16 }
  0xa1   :  { %301 = vmatmul.msk.f32.gmra.mxu1 %vm91_vm2, %v298_v14 }
  0xa9   :  { %302 = vmatmul.msk.f32.gmra.mxu1 %vm91_vm2, %v299_v7 }
 0x116   :  { %v115_v31 = vpop.f32.mrf.mxu1 }
 0x117   :  { %v116_v39 = vadd.f32 %v115_v31, %v79_v38 }
 0x11e   :  { %v118_v33 = vpop.f32.mrf.mxu1 }
 0x11f   :  { %v119_v36 = vadd.f32 %v118_v33, %v84_v32 }
 0x126   :  { %v121_v35 = vpop.f32.mrf.mxu1 }
 0x127   :  { %v122_v37 = vadd.f32 %v121_v35, %v89_v34 }
 0x129   :  { %337 = vtanh.f32 %v122_v37 }
 0x12a   :  { %339 = vtanh.f32 %v119_v36 }
 0x12b   :  { %341 = vtanh.f32 %v116_v39 }
 0x12f   :  { %v338_v40 = vpop.eup %337 }
 0x130   :  { %165 = vmatpush.msrb.mxu2 %v338_v40  ;;  %v340_v41 = vpop.eup %339 }
 0x131   :  { %v342_v42 = vpop.eup %341 }
 0x132   :  { %166 = vmatpush.msrb.mxu2 %v340_v41 }
 0x134   :  { %167 = vmatpush.msrb.mxu2 %v342_v42 }
 0x135   :  { %306 = vmatmul.msk.f32.vlgmr.msrb.gmra.mxu2 %vm91_vm2, %v303_v20 }
 0x13d   :  { %307 = vmatmul.msk.f32.gmra.mxu2 %vm91_vm2, %v304_v9  ;;  %v252_v9 = vpop.permute.xlu2 %251 }
 0x145   :  { %308 = vmatmul.msk.f32.gmra.mxu2 %vm91_vm2, %v398_v8 }
 0x1b8   :  { %v169_v43 = vpop.f32.mrf.mxu2 }
 0x1b9   :  { %v170_v51 = vadd.f32 %v169_v43, %v134_v50 }
 0x1c0   :  { %v172_v44 = vpop.f32.mrf.mxu2 }
 0x1c1   :  { %v173_v48 = vadd.f32 %v172_v44, %v139_v46 }
 0x1c8   :  { %v175_v47 = vpop.f32.mrf.mxu2 }
 0x1c9   :  { %v176_v49 = vadd.f32 %v175_v47, %v144_v45 }
 0x1cb   :  { %343 = vtanh.f32 %v176_v49 }
 0x1cc   :  { %345 = vtanh.f32 %v173_v48 }
 0x1cd   :  { %347 = vtanh.f32 %v170_v51 }
 0x1d1   :  { %v344_v52 = vpop.eup %343 }
 0x1d2   :  { %219 = vmatpush.msra.mxu3 %v344_v52  ;;  %v346_v53 = vpop.eup %345 }
 0x1d3   :  { %v348_v54 = vpop.eup %347 }
 0x1d4   :  { %220 = vmatpush.msra.mxu3 %v346_v53 }
 0x1d6   :  { %221 = vmatpush.msra.mxu3 %v348_v54 }
 0x1d7   :  { %312 = vmatmul.msk.f32.vlgmr.msra.gmra.mxu3 %vm91_vm2, %v309_v26 }
 0x1df   :  { %313 = vmatmul.msk.f32.gmra.mxu3 %vm91_vm2, %v412_v11 }
 0x1e7   :  { %314 = vmatmul.msk.f32.gmra.mxu3 %vm91_vm2, %v407_v10 }
 0x25a   :  { %v223_v55 = vpop.f32.mrf.mxu3 }
 0x25b   :  { %v224_v63 = vadd.f32 %v223_v55, %v188_v62 }
 0x262   :  { %v226_v56 = vpop.f32.mrf.mxu3 }
 0x263   :  { %v227_v60 = vadd.f32 %v226_v56, %v193_v58 }
 0x26a   :  { %v229_v59 = vpop.f32.mrf.mxu3 }
 0x26b   :  { %v230_v61 = vadd.f32 %v229_v59, %v198_v57 }
 0x26d   :  { %349 = vtanh.f32 %v230_v61 }
 0x26e   :  { %351 = vtanh.f32 %v227_v60 }
 0x26f   :  { %353 = vtanh.f32 %v224_v63 }
 0x273   :  { %v350_v0 = vpop.eup %349 }
 0x274   :  { %273 = vmatpush.msrb.mxu0 %v350_v0  ;;  %v352_v1 = vpop.eup %351 }
 0x275   :  { %v354_v2 = vpop.eup %353 }
 0x276   :  { %274 = vmatpush.msrb.mxu0 %v352_v1 }
 0x278   :  { %275 = vmatpush.msrb.mxu0 %v354_v2 }
 0x279   :  { %318 = vmatmul.msk.f32.vlgmr.msrb.gmra.mxu0 %vm91_vm2, %v419_v12 }
 0x281   :  { %319 = vmatmul.msk.f32.gmra.mxu0 %vm91_vm2, %v424_v13 }
 0x289   :  { %320 = vmatmul.msk.f32.gmra.mxu0 %vm91_vm2, %v443_v30 }
 0x2f6   :  { %v277_v4 = vpop.f32.mrf.mxu0 }
 0x2f7   :  { %v278_v5 = vadd.f32 %v277_v4, %v242_v3 }
 0x2f9   :  { %286 = vst [vmem:[%s475_s2] sm:$0xff] %v278_v5 }
 0x2fe   :  { %v280_v7 = vpop.f32.mrf.mxu0 }
 0x2ff   :  { %v281_v8 = vadd.f32 %v280_v7, %v247_v6 }
 0x301   :  { %287 = vst [vmem:[%s475_s2 + $0x8] sm:$0xff] %v281_v8 }
 0x306   :  { %v283_v10 = vpop.f32.mrf.mxu0 }
 0x307   :  { %v284_v11 = vadd.f32 %v283_v10, %v252_v9 }
 0x309   :  { %288 = vst [vmem:[%s475_s2 + $0x10] sm:$0x1f] %v284_v11 }

</bundles_post_ra>
